<compile_context>
chip_gen: v7x
topology: tpu7x:2x2x1
jax: 0.10.0
libtpu: 0.0.40
codegen_flags: <defaults>
</compile_context>

<pallas_src>
from functools import partial

import jax
import jax.numpy as jnp
from jax.experimental import pallas as pl
from jax.experimental.pallas import tpu as pltpu


# ---------------------------------------------------------------------------
# Kernel 1: Theta MLP  (Linear -> ReLU6 -> Linear -> ReLU6 -> BatchNorm1d)
#           then 2*sigmoid-1 and the a/b coefficient split, emitted in the
#           (k, n, C) layout consumed by the streaming kernel.
# ---------------------------------------------------------------------------
def _theta_kernel(k, C, cv_ref, w1_ref, b1_ref, w2_ref, b2_ref, g_ref, beta_ref,
                  a_ref, b_ref):
    cv = cv_ref[...]                                               # (n, D)
    h = jnp.dot(cv, w1_ref[...], preferred_element_type=jnp.float32) + b1_ref[...]
    h = jnp.clip(h, 0.0, 6.0)                                      # ReLU6
    t = jnp.dot(h, w2_ref[...], preferred_element_type=jnp.float32) + b2_ref[...]
    t = jnp.clip(t, 0.0, 6.0)                                      # ReLU6
    # BatchNorm1d: freshly constructed module (training mode) -> batch stats,
    # biased var, eps=1e-5, gamma=1, beta=0.
    # TODO(synk): running-stat updates (a training side effect) are not reproduced.
    mean = jnp.mean(t, axis=0, keepdims=True)
    var = jnp.mean((t - mean) ** 2, axis=0, keepdims=True)
    t = (t - mean) * jax.lax.rsqrt(var + 1e-5) * g_ref[...] + beta_ref[...]
    theta = 2.0 * jax.nn.sigmoid(t) - 1.0                          # (n, 2*k*C)

    kc = k * C
    for kk in range(k):                                            # static unroll
        ta = theta[:, kk * C:(kk + 1) * C]                         # (n, C)
        if k % 2 == 0:
            # a_def is constant over each per-k chunk: +1 for kk < k/2, else +0.
            a_ref[kk] = ta + 1.0 if kk < k // 2 else ta
        else:
            cols = jax.lax.broadcasted_iota(jnp.int32, ta.shape, 1) + kk * C
            a_def = jnp.where(cols < kc // 2, 1.0, 0.0).astype(ta.dtype)
            a_ref[kk] = ta + a_def
        b_ref[kk] = theta[:, kc + kk * C:kc + (kk + 1) * C] * 0.5  # (n, C)


def _compute_ab(cv, params, k, in_channel):
    n, d_in = cv.shape
    d_hid = params["w1"].shape[1]
    d_out = params["w2"].shape[1]
    # Explicit VMEM budget for the (untiled) parameter + intermediate blocks
    # so the default scoped limit (16 MiB on v5e) is not the silent ceiling.
    # TODO(synk): for very large 2*k*C, column-tile w2/b2/theta with a 1-D grid
    # instead of a single untiled block (BatchNorm stats are per-column, so the
    # split is legal); matters first on v5e.
    param_bytes = 4 * (n * d_in + d_in * d_hid + d_hid + d_hid * d_out + 3 * d_out)
    inter_bytes = 4 * (n * d_hid + 3 * n * d_out + 2 * k * n * in_channel)
    theta_vmem = int(min(48 << 20,
                         max(2 * (param_bytes + inter_bytes) + (2 << 20),
                             8 << 20)))

    vmem = pl.BlockSpec(memory_space=pltpu.MemorySpace.VMEM)
    a3, b3 = pl.pallas_call(
        partial(_theta_kernel, k, in_channel),
        out_shape=(jax.ShapeDtypeStruct((k, n, in_channel), jnp.float32),
                   jax.ShapeDtypeStruct((k, n, in_channel), jnp.float32)),
        in_specs=[vmem] * 7,
        out_specs=(vmem, vmem),
        compiler_params=pltpu.CompilerParams(vmem_limit_bytes=theta_vmem),
    )(cv, params["w1"], params["b1"], params["w2"], params["b2"],
      params["gamma"], params["beta"])
    return a3, b3


# ---------------------------------------------------------------------------
# Kernel 2: elementwise dynamic ReLU   out = max_k (x * a_k + b_k)
#   x block   : (R, T)     rows = flattened (sample, channel), lanes = spatial
#   a/b block : (k, R, 1)  resident across spatial tiles, (R,1) lane-broadcast
# ---------------------------------------------------------------------------
def _drelu_kernel(k, compute_dtype, x_ref, a_ref, b_ref, o_ref):
    x = x_ref[...].astype(compute_dtype)                         # (R, T)
    y = x * a_ref[0].astype(compute_dtype) + b_ref[0].astype(compute_dtype)
    for kk in range(1, k):                                       # static unroll
        y = jnp.maximum(y, x * a_ref[kk].astype(compute_dtype)
                        + b_ref[kk].astype(compute_dtype))
    o_ref[...] = y.astype(o_ref.dtype)


def _choose_tiles(nc, hw, itemsize, target_bytes=4 << 20, min_blocks=4):
    """Pick (R, T): R multiple of the dtype sublane tile, T multiple of 128,
    block ~target_bytes, and at least min_blocks grid blocks when possible."""
    sub = {4: 8, 2: 16, 1: 32}.get(itemsize, 8)      # sublane tile from dtype
    lane = 128
    target_elems = max(target_bytes // itemsize, sub * lane)

    # Lane axis: multiple of 128, grows with H*W (lane-dense unmasked stores on
    # all but the final ragged tile, which Pallas masks automatically).
    t_cap = max(lane, (target_elems // sub) // lane * lane)
    t = min(pl.cdiv(hw, lane) * lane, t_cap)

    # Sublane axis: multiple of `sub`, sized so one x block is ~target_bytes.
    r = max(sub, (target_elems // t) // sub * sub)
    r = min(r, pl.cdiv(nc, sub) * sub)

    # Megacore: ensure >=2 (ideally >=min_blocks) blocks so both v7x
    # TensorCores get work; never shrink below (sub, lane).
    def nblocks(r_, t_):
        return pl.cdiv(nc, r_) * pl.cdiv(hw, t_)

    while nblocks(r, t) < min_blocks:
        if t > lane:
            t = max(lane, (t // 2) // lane * lane)
        elif r > sub:
            r = max(sub, (r // 2) // sub * sub)
        else:
            break
    return r, t


def dynamic_relu(x, control_vector, params, k=2):
    n, C, H, W = x.shape
    cv = control_vector.reshape(n, -1).astype(jnp.float32)    # flatten + squeeze

    a3, b3 = _compute_ab(cv, params, k, C)                    # (k, n, C) each
    nc, hw = n * C, H * W
    a = a3.reshape(k, nc, 1)                                  # metadata-only reshape
    b = b3.reshape(k, nc, 1)
    xr = x.reshape(nc, hw)

    itemsize = x.dtype.itemsize
    R, T = _choose_tiles(nc, hw, itemsize)
    grid = (pl.cdiv(nc, R), pl.cdiv(hw, T))

    # bf16 inputs: compute in bf16 (double-rate VALU on v6e/v7x, half the vreg
    # pressure); everything else computes in f32.
    # TODO(synk): on v5e (no bf16 VALU) a f32 compute path avoids conversions.
    compute_dtype = jnp.bfloat16 if x.dtype == jnp.bfloat16 else jnp.float32

    # Explicit VMEM budget: double-buffered x + out tiles, double-buffered
    # coefficient blocks, plus slack.  Capped at 48 MiB (v7x physical VMEM is
    # 64 MiB per TensorCore).
    block_bytes = R * T * itemsize
    coeff_bytes = 2 * 2 * k * R * 4
    vmem_limit = int(min(48 << 20,
                         max(4 * block_bytes + coeff_bytes + (2 << 20),
                             8 << 20)))

    cost = pl.CostEstimate(
        flops=(3 * k - 1) * nc * hw,
        transcendentals=0,
        bytes_accessed=2 * nc * hw * itemsize + 2 * k * nc * 4)

    out = pl.pallas_call(
        partial(_drelu_kernel, k, compute_dtype),
        out_shape=jax.ShapeDtypeStruct((nc, hw), x.dtype),
        grid=grid,
        in_specs=[pl.BlockSpec((R, T), lambda i, j: (i, j)),
                  pl.BlockSpec((k, R, 1), lambda i, j: (0, i, 0)),
                  pl.BlockSpec((k, R, 1), lambda i, j: (0, i, 0))],
        out_specs=pl.BlockSpec((R, T), lambda i, j: (i, j)),
        compiler_params=pltpu.CompilerParams(
            dimension_semantics=("parallel", "parallel"),
            vmem_limit_bytes=vmem_limit),
        cost_estimate=cost,
    )(xr, a, b)
    return out.reshape(n, C, H, W)


# ---------------------------------------------------------------------------
# Parameter init (deterministic, PyTorch-Linear-style uniform bounds).
# Weights stored as (in, out) for x @ W.
# ---------------------------------------------------------------------------
def init_params(key, in_channel, control_dim, k=2):
    d_in, d_hid, d_out = control_dim, 4 * control_dim, 2 * k * in_channel
    k1, k2, k3, k4 = jax.random.split(key, 4)
    lim1 = 1.0 / jnp.sqrt(d_in)
    lim2 = 1.0 / jnp.sqrt(d_hid)
    return {
        "w1": jax.random.uniform(k1, (d_in, d_hid), jnp.float32, -lim1, lim1),
        "b1": jax.random.uniform(k2, (1, d_hid), jnp.float32, -lim1, lim1),
        "w2": jax.random.uniform(k3, (d_hid, d_out), jnp.float32, -lim2, lim2),
        "b2": jax.random.uniform(k4, (1, d_out), jnp.float32, -lim2, lim2),
        "gamma": jnp.ones((1, d_out), jnp.float32),
        "beta": jnp.zeros((1, d_out), jnp.float32),
    }


# ---------------------------------------------------------------------------
# Pure-JAX reference (for correctness check)
# ---------------------------------------------------------------------------
def reference(x, control_vector, params, k=2):
    n, C, H, W = x.shape
    cv = control_vector.reshape(n, -1).astype(jnp.float32)
    h = jnp.clip(cv @ params["w1"] + params["b1"], 0.0, 6.0)
    t = jnp.clip(h @ params["w2"] + params["b2"], 0.0, 6.0)
    mean = jnp.mean(t, axis=0, keepdims=True)
    var = jnp.mean((t - mean) ** 2, axis=0, keepdims=True)
    t = (t - mean) / jnp.sqrt(var + 1e-5) * params["gamma"] + params["beta"]
    theta = 2.0 * jax.nn.sigmoid(t) - 1.0
    kc = k * C
    a_def = jnp.concatenate([jnp.ones((n, kc // 2)), jnp.zeros((n, kc // 2))], 1)
    a = (theta[:, :kc] + a_def).reshape(n, k, C)
    b = (theta[:, kc:] * 0.5).reshape(n, k, C)
    y = (jnp.einsum("nchw,nkc->nchwk", x, a)
         + jnp.einsum("nchw,nkc->nchwk", jnp.ones_like(x), b))
    return y.max(axis=4)


if __name__ == "__main__":
    n, C, H, W = 2, 4, 16, 16
    tokens, D = 1, 8         # control_demension = tokens * d = 8
    k = 2

    key = jax.random.PRNGKey(0)
    kx, kc_, kp = jax.random.split(key, 3)
    x = jax.random.normal(kx, (n, C, H, W), dtype=jnp.float32)
    control_vector = jax.random.normal(kc_, (n, tokens, D), dtype=jnp.float32)
    params = init_params(kp, C, D, k)

    out = dynamic_relu(x, control_vector, params, k)
    out = jax.block_until_ready(out)

    ref = reference(x, control_vector, params, k)
    assert out.shape == (n, C, H, W)
    assert jnp.allclose(out, ref, rtol=1e-5, atol=1e-5), "mismatch vs reference"
    print("KERNEL_OK")
</pallas_src>

<mosaic_0001>
module attributes {stable_mosaic.version = 11 : i64} {
  func.func @_theta_kernel(%arg0: memref<2x8xf32, #tpu.memory_space<vmem>>, %arg1: memref<8x32xf32, #tpu.memory_space<vmem>>, %arg2: memref<1x32xf32, #tpu.memory_space<vmem>>, %arg3: memref<32x16xf32, #tpu.memory_space<vmem>>, %arg4: memref<1x16xf32, #tpu.memory_space<vmem>>, %arg5: memref<1x16xf32, #tpu.memory_space<vmem>>, %arg6: memref<1x16xf32, #tpu.memory_space<vmem>>, %arg7: memref<2x2x4xf32, #tpu.memory_space<vmem>>, %arg8: memref<2x2x4xf32, #tpu.memory_space<vmem>>) attributes {dimension_semantics = [], scalar_prefetch = 0 : i64, scratch_operands = 0 : i64, tpu.core_type = #tpu.core_type<tc>} {
    %c0 = arith.constant 0 : index
    %c0_0 = arith.constant 0 : index
    %0 = vector.load %arg0[%c0, %c0_0] : memref<2x8xf32, #tpu.memory_space<vmem>>, vector<2x8xf32>
    %c0_1 = arith.constant 0 : index
    %c0_2 = arith.constant 0 : index
    %1 = vector.load %arg1[%c0_1, %c0_2] : memref<8x32xf32, #tpu.memory_space<vmem>>, vector<8x32xf32>
    %cst = arith.constant dense<0.000000e+00> : vector<2x32xf32>
    %2 = tpu.matmul %0, %1, %cst {dimension_numbers = #tpu.dot_dimension_numbers<[1], [0], [0], [1], [0, 0, 1, 1], [], []>} : vector<2x8xf32>, vector<8x32xf32>, vector<2x32xf32> -> vector<2x32xf32>
    %c0_3 = arith.constant 0 : index
    %c0_4 = arith.constant 0 : index
    %3 = vector.load %arg2[%c0_3, %c0_4] : memref<1x32xf32, #tpu.memory_space<vmem>>, vector<1x32xf32>
    %4 = vector.broadcast %3 : vector<1x32xf32> to vector<2x32xf32>
    %5 = arith.addf %2, %4 : vector<2x32xf32>
    %cst_5 = arith.constant 0.000000e+00 : f32
    %cst_6 = arith.constant 6.000000e+00 : f32
    %6 = vector.broadcast %cst_5 : f32 to vector<2x32xf32>
    %7 = arith.maximumf %6, %5 : vector<2x32xf32>
    %8 = vector.broadcast %cst_6 : f32 to vector<2x32xf32>
    %9 = arith.minimumf %8, %7 : vector<2x32xf32>
    %c0_7 = arith.constant 0 : index
    %c0_8 = arith.constant 0 : index
    %10 = vector.load %arg3[%c0_7, %c0_8] : memref<32x16xf32, #tpu.memory_space<vmem>>, vector<32x16xf32>
    %cst_9 = arith.constant dense<0.000000e+00> : vector<2x16xf32>
    %11 = tpu.matmul %9, %10, %cst_9 {dimension_numbers = #tpu.dot_dimension_numbers<[1], [0], [0], [1], [0, 0, 1, 1], [], []>} : vector<2x32xf32>, vector<32x16xf32>, vector<2x16xf32> -> vector<2x16xf32>
    %c0_10 = arith.constant 0 : index
    %c0_11 = arith.constant 0 : index
    %12 = vector.load %arg4[%c0_10, %c0_11] : memref<1x16xf32, #tpu.memory_space<vmem>>, vector<1x16xf32>
    %13 = vector.broadcast %12 : vector<1x16xf32> to vector<2x16xf32>
    %14 = arith.addf %11, %13 : vector<2x16xf32>
    %cst_12 = arith.constant 0.000000e+00 : f32
    %cst_13 = arith.constant 6.000000e+00 : f32
    %15 = vector.broadcast %cst_12 : f32 to vector<2x16xf32>
    %16 = arith.maximumf %15, %14 : vector<2x16xf32>
    %17 = vector.broadcast %cst_13 : f32 to vector<2x16xf32>
    %18 = arith.minimumf %17, %16 : vector<2x16xf32>
    %cst_14 = arith.constant dense<0.000000e+00> : vector<16xf32>
    %19 = vector.multi_reduction <add>, %18, %cst_14 [0] : vector<2x16xf32> to vector<16xf32>
    %20 = vector.shape_cast %19 : vector<16xf32> to vector<1x16xf32>
    %cst_15 = arith.constant 2.000000e+00 : f32
    %21 = vector.broadcast %cst_15 : f32 to vector<1x16xf32>
    %22 = arith.divf %20, %21 : vector<1x16xf32>
    %23 = vector.broadcast %22 : vector<1x16xf32> to vector<2x16xf32>
    %24 = arith.subf %18, %23 : vector<2x16xf32>
    %25 = arith.mulf %24, %24 : vector<2x16xf32>
    %cst_16 = arith.constant dense<0.000000e+00> : vector<16xf32>
    %26 = vector.multi_reduction <add>, %25, %cst_16 [0] : vector<2x16xf32> to vector<16xf32>
    %27 = vector.shape_cast %26 : vector<16xf32> to vector<1x16xf32>
    %cst_17 = arith.constant 2.000000e+00 : f32
    %28 = vector.broadcast %cst_17 : f32 to vector<1x16xf32>
    %29 = arith.divf %27, %28 : vector<1x16xf32>
    %30 = vector.broadcast %22 : vector<1x16xf32> to vector<2x16xf32>
    %31 = arith.subf %18, %30 : vector<2x16xf32>
    %cst_18 = arith.constant 9.99999974E-6 : f32
    %32 = vector.broadcast %cst_18 : f32 to vector<1x16xf32>
    %33 = arith.addf %29, %32 : vector<1x16xf32>
    %34 = math.rsqrt %33 : vector<1x16xf32>
    %35 = vector.broadcast %34 : vector<1x16xf32> to vector<2x16xf32>
    %36 = arith.mulf %31, %35 : vector<2x16xf32>
    %c0_19 = arith.constant 0 : index
    %c0_20 = arith.constant 0 : index
    %37 = vector.load %arg5[%c0_19, %c0_20] : memref<1x16xf32, #tpu.memory_space<vmem>>, vector<1x16xf32>
    %38 = vector.broadcast %37 : vector<1x16xf32> to vector<2x16xf32>
    %39 = arith.mulf %36, %38 : vector<2x16xf32>
    %c0_21 = arith.constant 0 : index
    %c0_22 = arith.constant 0 : index
    %40 = vector.load %arg6[%c0_21, %c0_22] : memref<1x16xf32, #tpu.memory_space<vmem>>, vector<1x16xf32>
    %41 = vector.broadcast %40 : vector<1x16xf32> to vector<2x16xf32>
    %42 = arith.addf %39, %41 : vector<2x16xf32>
    %43 = arith.negf %42 : vector<2x16xf32>
    %44 = math.exp %43 : vector<2x16xf32>
    %cst_23 = arith.constant 1.000000e+00 : f32
    %45 = vector.broadcast %cst_23 : f32 to vector<2x16xf32>
    %46 = arith.addf %45, %44 : vector<2x16xf32>
    %47 = arith.divf %45, %46 : vector<2x16xf32>
    %cst_24 = arith.constant 2.000000e+00 : f32
    %48 = vector.broadcast %cst_24 : f32 to vector<2x16xf32>
    %49 = arith.mulf %48, %47 : vector<2x16xf32>
    %cst_25 = arith.constant 1.000000e+00 : f32
    %50 = vector.broadcast %cst_25 : f32 to vector<2x16xf32>
    %51 = arith.subf %49, %50 : vector<2x16xf32>
    %52 = vector.extract_strided_slice %51 {offsets = [0, 0], sizes = [2, 4], strides = [1, 1]} : vector<2x16xf32> to vector<2x4xf32>
    %cst_26 = arith.constant 1.000000e+00 : f32
    %53 = vector.broadcast %cst_26 : f32 to vector<2x4xf32>
    %54 = arith.addf %52, %53 : vector<2x4xf32>
    %c0_27 = arith.constant 0 : index
    %c0_28 = arith.constant 0 : index
    %c0_29 = arith.constant 0 : index
    %55 = vector.load %arg7[%c0_27, %c0_28, %c0_29] : memref<2x2x4xf32, #tpu.memory_space<vmem>>, vector<1x2x4xf32>
    %56 = vector.shape_cast %55 : vector<1x2x4xf32> to vector<2x4xf32>
    %57 = vector.shape_cast %54 : vector<2x4xf32> to vector<1x2x4xf32>
    tpu.vector_store %arg7[%c0_27, %c0_28, %c0_29], %57 {strides = array<i32>} : memref<2x2x4xf32, #tpu.memory_space<vmem>>, vector<1x2x4xf32>,
    %58 = vector.extract_strided_slice %51 {offsets = [0, 8], sizes = [2, 4], strides = [1, 1]} : vector<2x16xf32> to vector<2x4xf32>
    %cst_30 = arith.constant 5.000000e-01 : f32
    %59 = vector.broadcast %cst_30 : f32 to vector<2x4xf32>
    %60 = arith.mulf %58, %59 : vector<2x4xf32>
    %c0_31 = arith.constant 0 : index
    %c0_32 = arith.constant 0 : index
    %c0_33 = arith.constant 0 : index
    %61 = vector.load %arg8[%c0_31, %c0_32, %c0_33] : memref<2x2x4xf32, #tpu.memory_space<vmem>>, vector<1x2x4xf32>
    %62 = vector.shape_cast %61 : vector<1x2x4xf32> to vector<2x4xf32>
    %63 = vector.shape_cast %60 : vector<2x4xf32> to vector<1x2x4xf32>
    tpu.vector_store %arg8[%c0_31, %c0_32, %c0_33], %63 {strides = array<i32>} : memref<2x2x4xf32, #tpu.memory_space<vmem>>, vector<1x2x4xf32>,
    %64 = vector.extract_strided_slice %51 {offsets = [0, 4], sizes = [2, 4], strides = [1, 1]} : vector<2x16xf32> to vector<2x4xf32>
    %c1 = arith.constant 1 : index
    %c0_34 = arith.constant 0 : index
    %c0_35 = arith.constant 0 : index
    %65 = vector.load %arg7[%c1, %c0_34, %c0_35] : memref<2x2x4xf32, #tpu.memory_space<vmem>>, vector<1x2x4xf32>
    %66 = vector.shape_cast %65 : vector<1x2x4xf32> to vector<2x4xf32>
    %67 = vector.shape_cast %64 : vector<2x4xf32> to vector<1x2x4xf32>
    tpu.vector_store %arg7[%c1, %c0_34, %c0_35], %67 {strides = array<i32>} : memref<2x2x4xf32, #tpu.memory_space<vmem>>, vector<1x2x4xf32>,
    %68 = vector.extract_strided_slice %51 {offsets = [0, 12], sizes = [2, 4], strides = [1, 1]} : vector<2x16xf32> to vector<2x4xf32>
    %cst_36 = arith.constant 5.000000e-01 : f32
    %69 = vector.broadcast %cst_36 : f32 to vector<2x4xf32>
    %70 = arith.mulf %68, %69 : vector<2x4xf32>
    %c1_37 = arith.constant 1 : index
    %c0_38 = arith.constant 0 : index
    %c0_39 = arith.constant 0 : index
    %71 = vector.load %arg8[%c1_37, %c0_38, %c0_39] : memref<2x2x4xf32, #tpu.memory_space<vmem>>, vector<1x2x4xf32>
    %72 = vector.shape_cast %71 : vector<1x2x4xf32> to vector<2x4xf32>
    %73 = vector.shape_cast %70 : vector<2x4xf32> to vector<1x2x4xf32>
    tpu.vector_store %arg8[%c1_37, %c0_38, %c0_39], %73 {strides = array<i32>} : memref<2x2x4xf32, #tpu.memory_space<vmem>>, vector<1x2x4xf32>,
    return
  }
}

</mosaic_0001>

<bundles_post_ra>
// kernel: tpu_custom_call.1
= control target key start
LH: loop header
LB: loop body
LE: loop exit
PB: predicated region body
PF: predicated region fallthrough
CT: control target
= control target key end

     0   :  { %14 = vsyncpa [#allocation3], 0  ;;  %vm39_vm0 = vcmask 64512   ;;  %v402_v2 = vmov 0.0   ;;  %vm403_vm1 = vmmov 0   ;;  %s515_s0 = inlined_call_operand.vmem [shape: f32[2,8], index: 0, kind: input, shape index: {}]   ;;  %s516_s1 = inlined_call_operand.vmem [shape: f32[8,32], index: 1, kind: input, shape index: {}]   ;;  %s517_s2 = inlined_call_operand.vmem [shape: f32[1,32], index: 2, kind: input, shape index: {}]   ;;  %s518_s3 = inlined_call_operand.vmem [shape: f32[32,16], index: 3, kind: input, shape index: {}]   ;;  %s519_s4 = inlined_call_operand.vmem [shape: f32[1,16], index: 4, kind: input, shape index: {}]   ;;  %s520_s5 = inlined_call_operand.vmem [shape: f32[1,16], index: 5, kind: input, shape index: {}]   ;;  %s521_s6 = inlined_call_operand.vmem [shape: f32[1,16], index: 6, kind: input, shape index: {}]   ;;  %s522_s7 = inlined_call_operand.hbm [shape: f32[2,2,4], index: 7, kind: output, shape index: {0}]   ;;  %s523_s8 = inlined_call_operand.hbm [shape: f32[2,2,4], index: 8, kind: output, shape index: {1}]  }
   0x1   :  { %v31_v0 = vld [vmem:[%s516_s1] sm:$0xff]  ;;  %316 = vmatprep.subr.mxu0 %v402_v2  ;;  %318 = vmatprep.mubr.msk.f32.mxu0 %vm403_vm1, %v402_v2 }
   0x2   :  { %v30_v1 = vld [vmem:[%s515_s0] sm:$0x3] }
   0x3   :  { %15 = vsyncpa [#allocation5], 0  ;;  %317 = vmatpush3.msra.mxu0 %v31_v0  ;;  %v404_v3 = vmov 0.0|0.0   ;;  %329 = vmatprep.mubr.msk.f32.mxu1 %vm403_vm1, %v402_v2  ;;  %v115_v4 = vld [vmem:[%s518_s3] sm:$0xff]  ;;  %v116_v5 = vld [vmem:[%s518_s3 + $0x8] sm:$0xff]  ;;  %vm126_vm2 = vcmask 261120  }
   0x4   :  { %332 = vmatprep.subr.bf16.mxu1 %v404_v3  ;;  %319 = vmatmul.mubr.msk.f32.vlgmr.msra.gmra.mrb[0].mxu0 %vm39_vm0, %v30_v1  ;;  %v333_v6 = vpack.c.bf16 %v116_v5, %v115_v4  ;;  %v117_v7 = vld [vmem:[%s518_s3 + $0x10] sm:$0xff]  ;;  %v118_v8 = vld [vmem:[%s518_s3 + $0x18] sm:$0xff]  ;;  %v301_v10 = vld [vmem:[%s517_s2] ss:$0 sm:$0xff]  ;;  %vm202_vm3 = vcmask 123904   ;;  %vm250_vm4 = vcmask 25600  }
   0x5   :  { %v336_v9 = vpack.c.bf16 %v118_v8, %v117_v7  ;;  %v303_v16 = vld [vmem:[%s519_s4] ss:$0 sm:$0xff]  ;;  %s405_s20 = smov 116   ;;  %s408_s21 = smov [#allocation4]  }
   0x6   :  { %334 = vmatpush3.bf16.msra.mxu1 %v333_v6  ;;  %v305_v42 = vld [vmem:[%s520_s5] ss:$0 sm:$0xff]  ;;  %s406_s5 = smov 120   ;;  %s286_s22 = sshll.u32 %s408_s21, 4  ;;  %s287_s22 = int_to_ptr.vmem [resolvable:$true] %s286_s22 }
   0x7   :  { %335 = vmatprep.subr.bf16.mxu1 %v404_v3  ;;  %v306_v44 = vld [vmem:[%s521_s6] ss:$0 sm:$0xff]  ;;  %s407_s6 = smov 124   ;;  %s409_s23 = smov [#allocation2]  }
   0x8   :  { %s274_s24 = sshll.u32 %s409_s23, 4  ;;  %s354_s25 = scalar_lea.vmem %s287_s22, 64  ;;  %s275_s24 = int_to_ptr.vmem [resolvable:$true] %s274_s24 }
   0x9   :  { %p355_p0 = scmp.ne.s32.totalorder %s287_s22, %s354_s25  ;;  %p359_p1 = scmp.lt.s32.totalorder %s287_s22, %s287_s22 }
   0xa   :  { %337 = vmatpush3.bf16.msra.mxu1 %v336_v9  ;;  %p360_p2 = scmp.lt.s32.totalorder %s354_s25, %s354_s25 }
   0xc   :  { %p361_p3 = por %p360_p2, %p359_p1 }
   0xe   :  { %p362_p4 = pnand %p361_p3, %p355_p0 }
  0xd7   :  { %v109_v11 = vpop.f32.mrb[0].mxu0 }
  0xd8   :  { %v110_v12 = vadd.f32 %v301_v10, %v109_v11  ;;  %v320_v13 = vpop.f32.mrb[1].mxu0 }
  0xda   :  { %v113_v14 = vmax.f32 %v110_v12, 0.0 }
  0xdc   :  { %v114_v15 = vmin.f32 %v113_v14, 6.0 }
  0xde   :  { %330 = vmatmul.mubr.msk.f32.vlgmr.msra.gmra.mrb[0].mxu1 %vm126_vm2, %v114_v15 }
 0x1b1   :  { %v196_v17 = vpop.f32.mrb[0].mxu1 }
 0x1b2   :  { %v197_v18 = vadd.f32 %v303_v16, %v196_v17  ;;  %v331_v19 = vpop.f32.mrb[1].mxu1 }
 0x1b4   :  { %v200_v20 = vmax.f32 %v197_v18, 0.0 }
 0x1b6   :  { %v201_v21 = vmin.f32 %v200_v20, 6.0 }
 0x1b8   :  { %v203_v22 = vsel %vm202_vm3, %v201_v21, 0.0 }
 0x1b9   :  { %v204_v23 = vrot.slane %v203_v22, 4 }
 0x1bb   :  { %v205_v24 = vadd.f32 %v204_v23, %v203_v22 }
 0x1bd   :  { %v206_v25 = vrot.slane %v205_v24, 2 }
 0x1bf   :  { %v207_v26 = vadd.f32 %v206_v25, %v205_v24 }
 0x1c1   :  { %v208_v27 = vrot.slane %v207_v26, 1 }
 0x1c3   :  { %v209_v28 = vadd.f32 %v208_v27, %v207_v26 }
 0x1c5   :  { %v211_v29 = vmul.f32 0.5, %v209_v28 }
 0x1c7   :  { %v212_v30 = vsub.f32 %v201_v21, %v211_v29 }
 0x1c9   :  { %v213_v31 = vmul.f32 %v212_v30, %v212_v30 }
 0x1cb   :  { %v214_v32 = vsel %vm202_vm3, %v213_v31, 0.0 }
 0x1cc   :  { %v215_v33 = vrot.slane %v214_v32, 4 }
 0x1ce   :  { %v216_v34 = vadd.f32 %v215_v33, %v214_v32 }
 0x1d0   :  { %v217_v35 = vrot.slane %v216_v34, 2 }
 0x1d2   :  { %v218_v36 = vadd.f32 %v217_v35, %v216_v34 }
 0x1d4   :  { %v219_v37 = vrot.slane %v218_v36, 1 }
 0x1d6   :  { %v220_v38 = vadd.f32 %v219_v37, %v218_v36 }
 0x1d8   :  { %v221_v39 = vmul.f32 0.5, %v220_v38 }
 0x1da   :  { %v222_v40 = vadd.f32 1e-05, %v221_v39 }
 0x1dc   :  { %348 = vrsqrt.f32 %v222_v40 }
 0x1e6   :  { %v349_v41 = vpop.eup %348 }
 0x1e7   :  { %v224_v43 = vmul.f32 %v349_v41, %v212_v30 }
 0x1e9   :  { %v232_v45 = vmul.f32 %v305_v42, %v224_v43 }
 0x1eb   :  { %v240_v46 = vadd.f32 %v306_v44, %v232_v45 }
 0x1ed   :  { %v307_v47 = vmul.f32 -1.442695, %v240_v46 }
 0x1ef   :  { %350 = vpow2.f32 %v307_v47 }
 0x1f9   :  { %v351_v48 = vpop.eup %350 }
 0x1fa   :  { %v244_v49 = vadd.f32 1.0, %v351_v48 }
 0x1fc   :  { %352 = vrcp.f32 %v244_v49 }
 0x206   :  { %v353_v50 = vpop.eup %352 }
 0x207   :  { %v247_v51 = vmul.f32 2.0, %v353_v50 }
 0x209   :  { %v308_v52 = vadd.f32 -1.0, %v247_v51 }
 0x20b   :  { %v252_v53 = vmul.f32 0.5, %v308_v52  ;;  %v249_v54 = vadd.f32 1.0, %v308_v52 }
 0x20d   :  { %264 = vrot.lane.b32.xlu1 %v252_v53, %s405_s20  ;;  %254 = vrot.lane.b32.xlu0 %v252_v53, %s406_s5  ;;  %251 = vst.msk [vmem:[#allocation2] sm:$0x3] %vm250_vm4, %v249_v54 }
 0x211   :  { %259 = vrot.lane.b32.xlu0 %v308_v52, %s407_s6 }
 0x27f   :  { %v265_v55 = vpop.permute.xlu1 %264  ;;  %v255_v56 = vpop.permute.xlu0 %254 }
 0x280   :  { %268 = vst.msk [vmem:[#allocation4 + $0x2] sm:$0x3] %vm250_vm4, %v265_v55  ;;  %257 = vst.msk [vmem:[#allocation4] sm:$0x3] %vm250_vm4, %v255_v56 }
 0x281   :  { %365 = shalt.err (!%p362_p4)
}
 0x282   :  { %s366_s28 = scalar_lea.hbm %s523_s8, 64 }
 0x283   :  { %p367_p5 = scmp.ne.s32.totalorder %s523_s8, %s366_s28  ;;  %p370_p6 = scmp.lt.u32.totalorder %s366_s28, %s523_s8 }
 0x285   :  { %p372_p7 = pnand %p370_p6, %p367_p5 }
 0x287   :  { %375 = shalt.err (!%p372_p7)
}
 0x288   :  { %s410_s1 = smov 32   ;;  %s411_s11 = smov 2   ;;  %v260_v57 = vpop.permute.xlu0 %259 }
 0x289   :  { %292 = dma.vmem_to_hbm [thread:$0]  %s287_s22, 64, %s523_s8, [#allocation5], %s410_s1, %s410_s1, %s411_s11   ;;  %263 = vst.msk [vmem:[#allocation2 + $0x2] sm:$0x3] %vm250_vm4, %v260_v57 }
 0x28a   :  { %s376_s13 = scalar_lea.vmem %s275_s24, 64  ;;  %p381_p9 = scmp.lt.s32.totalorder %s275_s24, %s275_s24 }
 0x28b   :  { %p377_p8 = scmp.ne.s32.totalorder %s275_s24, %s376_s13  ;;  %p382_p10 = scmp.lt.s32.totalorder %s376_s13, %s376_s13 }
 0x28d   :  { %p383_p11 = por %p382_p10, %p381_p9 }
 0x28f   :  { %p384_p12 = pnand %p383_p11, %p377_p8 }
 0x291   :  { %387 = shalt.err (!%p384_p12)
}
 0x292   :  { %s388_s16 = scalar_lea.hbm %s522_s7, 64 }
 0x293   :  { %p389_p13 = scmp.ne.s32.totalorder %s522_s7, %s388_s16  ;;  %p392_p0 = scmp.lt.u32.totalorder %s388_s16, %s522_s7 }
 0x295   :  { %p394_p1 = pnand %p392_p0, %p389_p13 }
 0x297   :  { %397 = shalt.err (!%p394_p1)
}
 0x298   :  { %280 = dma.vmem_to_hbm [thread:$0]  %s275_s24, 64, %s522_s7, [#allocation3], %s410_s1, %s410_s1, %s411_s11  }
 0x299   :  { %398 = dma.done.wait [#allocation3], 64  }
 0x29a   :  { %399 = vsyncadd [#allocation3], 4294967232 }
 0x29b   :  { %400 = dma.done.wait [#allocation5], 64  }
 0x29c   :  { %401 = vsyncadd [#allocation5], 4294967232 }
 0x29d   :  { %299 = vsyncpa [#allocation3], 1 }
 0x29e   :  { %300 = vsyncpa [#allocation5], 1 }

</bundles_post_ra>
